<compile_context>
chip_gen: v7x
topology: tpu7x:2x2x1
jax: 0.10.0
libtpu: 0.0.40
codegen_flags: <defaults>
</compile_context>

<pallas_src>
import jax
import jax.numpy as jnp
from jax import lax
from jax.experimental import pallas as pl
from jax.experimental.pallas import tpu as pltpu


# -----------------------------------------------------------------------------
# Hardware introspection (conservative fallbacks keep every chip correct)
# -----------------------------------------------------------------------------
def _vmem_limit_bytes():
    # Half of physical VMEM, capped: ~64 MiB on v5e/v6e (128 MiB phys),
    # ~32 MiB on v7x (64 MiB phys). Fallback 32 MiB is safe everywhere.
    try:
        cap = int(pltpu.get_tpu_info().vmem_capacity_bytes)
        return max(16 * 1024 * 1024, min(cap // 2, 64 * 1024 * 1024))
    except Exception:
        return 32 * 1024 * 1024


def _num_tensorcores():
    # Only split the batch across cores when we can positively detect >1 TC;
    # on a single-TC chip a batch split doubles the number of serial passes
    # over T, so the conservative fallback is "don't split".
    try:
        info = pltpu.get_tpu_info()
    except Exception:
        return 1
    for attr in ("num_cores", "tensor_cores_per_chip", "num_tensorcores",
                 "cores_per_chip"):
        v = getattr(info, attr, None)
        if isinstance(v, int) and v > 0:
            return v
    return 1


# -----------------------------------------------------------------------------
# Fused kernel: per-block input projection + liquid recurrence + final FC
# -----------------------------------------------------------------------------
def _fused_liquid_kernel(x_ref, w_in_ref, b_in_ref, w_rec_ref, tau_ref,
                         w_fc_ref, b_fc_ref, out_ref, h_ref):
    # NOTE: correctness of the h_ref accumulator requires the TIME axis to be
    # the innermost grid axis and marked "arbitrary" (see wrapper); the batch
    # axis is "parallel" and may shard across TensorCores.
    t_blk = pl.program_id(1)
    n_t_blk = pl.num_programs(1)

    @pl.when(t_blk == 0)
    def _():
        h_ref[...] = jnp.zeros_like(h_ref)

    t_tile = x_ref.shape[0]
    mxu_dtype = w_rec_ref.dtype

    # Loop invariants hoisted once per block (JAX does not CSE broadcasts).
    b_in = b_in_ref[...]            # (1, H): b_in + b_rec folded in the wrapper
    inv_tau = 1.0 / tau_ref[...]    # (1, H): exact reciprocal; exact for tau == 1

    def step(t, h):
        # x_ref[t] is a contiguous (b_tile, D) leading-axis slab of the
        # double-buffered x block. Its projection does NOT depend on h, so the
        # scheduler overlaps it (plus bias add) with the serial h @ W_rec MXU
        # latency under the bounded unroll below. Only h @ W_rec is on the
        # sequential critical path.
        xw = jnp.dot(x_ref[t], w_in_ref[...],
                     preferred_element_type=jnp.float32) + b_in
        pre = xw + jnp.dot(h.astype(mxu_dtype), w_rec_ref[...],
                           preferred_element_type=jnp.float32)
        return h + (jnp.tanh(pre) - h) * inv_tau

    # TODO(synk): hold W_rec in the MXU weight registers across the whole time
    # block (pltpu.matmul_push_rhs once + matmul_acc_lhs/matmul_pop per step)
    # to shave per-step weight-load cycles off the serial critical path.
    h_ref[...] = lax.fori_loop(0, t_tile, step, h_ref[...],
                               unroll=min(8, t_tile))

    @pl.when(t_blk == n_t_blk - 1)
    def _():
        # TODO(synk): O < 128 makes this a masked (non lane-dense) store; it is
        # once per batch tile so negligible — pad O in the wrapper if it grows.
        out = (jnp.dot(h_ref[...].astype(w_fc_ref.dtype), w_fc_ref[...],
                       preferred_element_type=jnp.float32) + b_fc_ref[...])
        out_ref[...] = out.astype(out_ref.dtype)


# -----------------------------------------------------------------------------
# Tile selection
# -----------------------------------------------------------------------------
def _largest_divisor_at_most(n, cap):
    d = max(1, min(n, cap))
    while n % d:
        d -= 1
    return d


def _pick_batch_tile(batch, hidden, num_cores):
    """b_tile must divide batch and be a multiple of 8 (or the full batch)."""
    if batch % 8 != 0:
        return batch                       # block must equal the full dim
    cap = batch
    if num_cores >= 2 and batch % (8 * num_cores) == 0:
        cap = min(cap, batch // num_cores)  # megacore: shard batch across TCs
    # vreg-pressure cap: keep the loop-carried h (b_tile*H f32) within ~16 vregs
    vreg_cap = max(8, ((16 * 1024) // max(1, hidden)) // 8 * 8)
    cap = min(cap, vreg_cap)
    best = 8
    d = 8
    while d <= min(cap, batch):
        if batch % d == 0:
            best = d
        d += 8
    return best


def _pick_time_tile(seq_len, b_tile, d, itemsize, vmem_limit):
    # The only streamed tensor is x: double-buffered (t_tile, b_tile, D) blocks.
    # Keep the stream within ~1/4 of the scoped VMEM limit and cap t_tile so the
    # per-block serial loop (and its unrolled body) stays bounded.
    per_step = max(1, b_tile * d * itemsize)
    cap = max(1, (vmem_limit // 4) // (2 * per_step))
    cap = min(cap, 512)
    return _largest_divisor_at_most(seq_len, cap)


# -----------------------------------------------------------------------------
# Wrapper
# -----------------------------------------------------------------------------
def liquid_neural_network(x, params, *, matmul_dtype=jnp.float32):
    """Forward pass of LiquidNeuralNetwork.

    x: (B, T, D) float32 (matches PyTorch x[:, t, :]).
    params: dict of pre-transposed weights (see init_params).
    matmul_dtype: dtype fed to the MXU (float32 or bfloat16); accumulation,
                  hidden state, tanh and the liquid update stay float32.
    """
    B, T, D = x.shape
    H = params["w_in"].shape[1]
    O = params["w_fc"].shape[1]

    w_in = params["w_in"].astype(matmul_dtype)
    w_rec = params["w_rec"].astype(matmul_dtype)
    w_fc = params["w_fc"].astype(matmul_dtype)
    b_fused = (params["b_in"] + params["b_rec"]).astype(jnp.float32)  # folded once
    b_fc = params["b_fc"].astype(jnp.float32)
    tau = params["tau"].astype(jnp.float32)

    # Time-major copy of x so each recurrence step reads a contiguous
    # leading-axis (b_tile, D) slab. This costs one small B*T*D HBM round trip;
    # the big (T*B*H f32) xw intermediate of the old two-pass design is gone.
    # TODO(synk): read (b_tile, t_tile, D) blocks of the original (B, T, D) x
    # and relayout in-kernel to also remove this transpose.
    x_tm = jnp.transpose(x, (1, 0, 2)).astype(matmul_dtype)   # (T, B, D)

    vmem_limit = _vmem_limit_bytes()
    n_cores = _num_tensorcores()
    b_tile = _pick_batch_tile(B, H, n_cores)
    t_tile = _pick_time_tile(T, b_tile, D,
                             jnp.dtype(matmul_dtype).itemsize, vmem_limit)

    out = pl.pallas_call(
        _fused_liquid_kernel,
        out_shape=jax.ShapeDtypeStruct((B, O), jnp.float32),
        grid_spec=pltpu.PrefetchScalarGridSpec(
            num_scalar_prefetch=0,
            grid=(B // b_tile, T // t_tile),
            in_specs=[
                pl.BlockSpec((t_tile, b_tile, D), lambda b, t: (t, b, 0)),  # x stream
                pl.BlockSpec((D, H), lambda b, t: (0, 0)),                  # W_in
                pl.BlockSpec((1, H), lambda b, t: (0, 0)),                  # b_in+b_rec
                pl.BlockSpec((H, H), lambda b, t: (0, 0)),                  # W_rec
                pl.BlockSpec((1, H), lambda b, t: (0, 0)),                  # tau
                pl.BlockSpec((H, O), lambda b, t: (0, 0)),                  # W_fc
                pl.BlockSpec((1, O), lambda b, t: (0, 0)),                  # b_fc
            ],
            out_specs=pl.BlockSpec((b_tile, O), lambda b, t: (b, 0)),
            scratch_shapes=[pltpu.VMEM((b_tile, H), jnp.float32)],          # h state
        ),
        compiler_params=pltpu.CompilerParams(
            # Time axis MUST stay innermost + "arbitrary" (h_ref accumulates
            # across it); batch axis is "parallel" (megacore-shardable).
            dimension_semantics=("parallel", "arbitrary"),
            vmem_limit_bytes=vmem_limit,
        ),
    )(x_tm, w_in, b_fused, w_rec, tau, w_fc, b_fc)
    return out


# -----------------------------------------------------------------------------
# Params + pure-JAX reference (mirrors the PyTorch module)
# -----------------------------------------------------------------------------
def init_params(key, input_size, hidden_size, output_size):
    """Deterministic synthetic init. Weights stored pre-transposed: (in, out)."""
    k1, k2, k3, k4, k5, k6 = jax.random.split(key, 6)
    s_in = 1.0 / jnp.sqrt(input_size)
    s_rec = 1.0 / jnp.sqrt(hidden_size)
    return {
        "w_in": jax.random.uniform(k1, (input_size, hidden_size), jnp.float32, -s_in, s_in),
        "b_in": jax.random.uniform(k2, (1, hidden_size), jnp.float32, -s_in, s_in),
        "w_rec": jax.random.uniform(k3, (hidden_size, hidden_size), jnp.float32, -s_rec, s_rec),
        "b_rec": jax.random.uniform(k4, (1, hidden_size), jnp.float32, -s_rec, s_rec),
        "tau": jnp.ones((1, hidden_size), jnp.float32),   # nn.init.constant_(tau, 1.0)
        "w_fc": jax.random.uniform(k5, (hidden_size, output_size), jnp.float32, -s_rec, s_rec),
        "b_fc": jax.random.uniform(k6, (1, output_size), jnp.float32, -s_rec, s_rec),
    }


def reference_forward(x, p):
    """Pure-JAX reference mirroring the PyTorch forward (f32 everywhere)."""
    B, T, D = x.shape
    H = p["w_in"].shape[1]
    h = jnp.zeros((B, H), jnp.float32)
    for t in range(T):
        pre = x[:, t, :] @ p["w_in"] + p["b_in"] + h @ p["w_rec"] + p["b_rec"]
        h = h + (jnp.tanh(pre) - h) / p["tau"]
    return h @ p["w_fc"] + p["b_fc"]


if __name__ == "__main__":
    B, T, D, H, O = 2, 8, 8, 64, 1   # hidden_size=64, output_size=1 per the spec

    key = jax.random.PRNGKey(0)
    kx, kp = jax.random.split(key)
    x = jax.random.normal(kx, (B, T, D), dtype=jnp.float32)
    params = init_params(kp, D, H, O)

    ref = reference_forward(x, params)

    # f32 path: matches the PyTorch-equivalent reference within tight tolerance.
    out = jax.block_until_ready(liquid_neural_network(x, params))
    assert out.shape == (B, O)
    assert jnp.allclose(out, ref, atol=1e-5, rtol=1e-5), (out, ref)

    # bf16 MXU operands / f32 accumulation fast path (v6e / v7x).
    out_bf16 = jax.block_until_ready(
        liquid_neural_network(x, params, matmul_dtype=jnp.bfloat16))
    assert out_bf16.shape == (B, O)
    assert jnp.allclose(out_bf16, ref, atol=5e-2, rtol=5e-2), (out_bf16, ref)

    print("KERNEL_OK")
</pallas_src>

<mosaic_0001>
module attributes {stable_mosaic.version = 11 : i64} {
  func.func @_fused_liquid_kernel(%arg0: i32, %arg1: i32, %arg2: memref<8x2x8xf32, #tpu.memory_space<vmem>>, %arg3: memref<8x64xf32, #tpu.memory_space<vmem>>, %arg4: memref<1x64xf32, #tpu.memory_space<vmem>>, %arg5: memref<64x64xf32, #tpu.memory_space<vmem>>, %arg6: memref<1x64xf32, #tpu.memory_space<vmem>>, %arg7: memref<64x1xf32, #tpu.memory_space<vmem>>, %arg8: memref<1x1xf32, #tpu.memory_space<vmem>>, %arg9: memref<2x1xf32, #tpu.memory_space<vmem>>, %arg10: memref<2x64xf32, #tpu.memory_space<vmem>>) attributes {dimension_semantics = [#tpu.dimension_semantics<parallel>, #tpu.dimension_semantics<arbitrary>], iteration_bounds = array<i64: 1, 1>, scalar_prefetch = 0 : i64, scratch_operands = 1 : i64, tpu.core_type = #tpu.core_type<tc>, window_params = [{transform_indices = @transform_0, window_bounds = array<i64: 8, 2, 8>}, {pipeline_mode = #tpu.pipeline_mode<synchronous>, transform_indices = @transform_1, window_bounds = array<i64: 8, 64>}, {pipeline_mode = #tpu.pipeline_mode<synchronous>, transform_indices = @transform_2, window_bounds = array<i64: 1, 64>}, {pipeline_mode = #tpu.pipeline_mode<synchronous>, transform_indices = @transform_3, window_bounds = array<i64: 64, 64>}, {pipeline_mode = #tpu.pipeline_mode<synchronous>, transform_indices = @transform_4, window_bounds = array<i64: 1, 64>}, {pipeline_mode = #tpu.pipeline_mode<synchronous>, transform_indices = @transform_5, window_bounds = array<i64: 64, 1>}, {pipeline_mode = #tpu.pipeline_mode<synchronous>, transform_indices = @transform_6, window_bounds = array<i64: 1, 1>}, {transform_indices = @transform_7, window_bounds = array<i64: 2, 1>}]} {
    %c0_i32 = arith.constant 0 : i32
    %0 = arith.cmpi eq, %arg1, %c0_i32 : i32
    %1 = arith.extui %0 : i1 to i32
    %c0_i32_0 = arith.constant 0 : i32
    %2 = arith.cmpi ne, %1, %c0_i32_0 : i32
    scf.if %2 {
      %cst_75 = arith.constant 0.000000e+00 : f32
      %132 = vector.broadcast %cst_75 : f32 to vector<2x64xf32>
      %c0_76 = arith.constant 0 : index
      %c0_77 = arith.constant 0 : index
      %133 = vector.load %arg10[%c0_76, %c0_77] : memref<2x64xf32, #tpu.memory_space<vmem>>, vector<2x64xf32>
      tpu.vector_store %arg10[%c0_76, %c0_77], %132 {strides = array<i32>} : memref<2x64xf32, #tpu.memory_space<vmem>>, vector<2x64xf32>,
    } else {
    }
    %c0 = arith.constant 0 : index
    %c0_1 = arith.constant 0 : index
    %3 = vector.load %arg4[%c0, %c0_1] : memref<1x64xf32, #tpu.memory_space<vmem>>, vector<1x64xf32>
    %c0_2 = arith.constant 0 : index
    %c0_3 = arith.constant 0 : index
    %4 = vector.load %arg6[%c0_2, %c0_3] : memref<1x64xf32, #tpu.memory_space<vmem>>, vector<1x64xf32>
    %cst = arith.constant 1.000000e+00 : f32
    %5 = vector.broadcast %cst : f32 to vector<1x64xf32>
    %6 = arith.divf %5, %4 : vector<1x64xf32>
    %c0_4 = arith.constant 0 : index
    %c0_5 = arith.constant 0 : index
    %7 = vector.load %arg10[%c0_4, %c0_5] : memref<2x64xf32, #tpu.memory_space<vmem>>, vector<2x64xf32>
    %c0_i32_6 = arith.constant 0 : i32
    %8 = arith.index_cast %c0_i32_6 : i32 to index
    %c0_7 = arith.constant 0 : index
    %c0_8 = arith.constant 0 : index
    %9 = vector.load %arg2[%8, %c0_7, %c0_8] : memref<8x2x8xf32, #tpu.memory_space<vmem>>, vector<1x2x8xf32>
    %10 = vector.shape_cast %9 : vector<1x2x8xf32> to vector<2x8xf32>
    %c0_9 = arith.constant 0 : index
    %c0_10 = arith.constant 0 : index
    %11 = vector.load %arg3[%c0_9, %c0_10] : memref<8x64xf32, #tpu.memory_space<vmem>>, vector<8x64xf32>
    %cst_11 = arith.constant dense<0.000000e+00> : vector<2x64xf32>
    %12 = tpu.matmul %10, %11, %cst_11 {dimension_numbers = #tpu.dot_dimension_numbers<[1], [0], [0], [1], [0, 0, 1, 1], [], []>} : vector<2x8xf32>, vector<8x64xf32>, vector<2x64xf32> -> vector<2x64xf32>
    %13 = vector.broadcast %3 : vector<1x64xf32> to vector<2x64xf32>
    %14 = arith.addf %12, %13 : vector<2x64xf32>
    %c0_12 = arith.constant 0 : index
    %c0_13 = arith.constant 0 : index
    %15 = vector.load %arg5[%c0_12, %c0_13] : memref<64x64xf32, #tpu.memory_space<vmem>>, vector<64x64xf32>
    %cst_14 = arith.constant dense<0.000000e+00> : vector<2x64xf32>
    %16 = tpu.matmul %7, %15, %cst_14 {dimension_numbers = #tpu.dot_dimension_numbers<[1], [0], [0], [1], [0, 0, 1, 1], [], []>} : vector<2x64xf32>, vector<64x64xf32>, vector<2x64xf32> -> vector<2x64xf32>
    %17 = arith.addf %14, %16 : vector<2x64xf32>
    %18 = math.tanh %17 : vector<2x64xf32>
    %19 = arith.subf %18, %7 : vector<2x64xf32>
    %20 = vector.broadcast %6 : vector<1x64xf32> to vector<2x64xf32>
    %21 = arith.mulf %19, %20 : vector<2x64xf32>
    %22 = arith.addf %7, %21 : vector<2x64xf32>
    %c1_i32 = arith.constant 1 : i32
    %23 = arith.index_cast %c1_i32 : i32 to index
    %c0_15 = arith.constant 0 : index
    %c0_16 = arith.constant 0 : index
    %24 = vector.load %arg2[%23, %c0_15, %c0_16] : memref<8x2x8xf32, #tpu.memory_space<vmem>>, vector<1x2x8xf32>
    %25 = vector.shape_cast %24 : vector<1x2x8xf32> to vector<2x8xf32>
    %c0_17 = arith.constant 0 : index
    %c0_18 = arith.constant 0 : index
    %26 = vector.load %arg3[%c0_17, %c0_18] : memref<8x64xf32, #tpu.memory_space<vmem>>, vector<8x64xf32>
    %cst_19 = arith.constant dense<0.000000e+00> : vector<2x64xf32>
    %27 = tpu.matmul %25, %26, %cst_19 {dimension_numbers = #tpu.dot_dimension_numbers<[1], [0], [0], [1], [0, 0, 1, 1], [], []>} : vector<2x8xf32>, vector<8x64xf32>, vector<2x64xf32> -> vector<2x64xf32>
    %28 = vector.broadcast %3 : vector<1x64xf32> to vector<2x64xf32>
    %29 = arith.addf %27, %28 : vector<2x64xf32>
    %c0_20 = arith.constant 0 : index
    %c0_21 = arith.constant 0 : index
    %30 = vector.load %arg5[%c0_20, %c0_21] : memref<64x64xf32, #tpu.memory_space<vmem>>, vector<64x64xf32>
    %cst_22 = arith.constant dense<0.000000e+00> : vector<2x64xf32>
    %31 = tpu.matmul %22, %30, %cst_22 {dimension_numbers = #tpu.dot_dimension_numbers<[1], [0], [0], [1], [0, 0, 1, 1], [], []>} : vector<2x64xf32>, vector<64x64xf32>, vector<2x64xf32> -> vector<2x64xf32>
    %32 = arith.addf %29, %31 : vector<2x64xf32>
    %33 = math.tanh %32 : vector<2x64xf32>
    %34 = arith.subf %33, %22 : vector<2x64xf32>
    %35 = vector.broadcast %6 : vector<1x64xf32> to vector<2x64xf32>
    %36 = arith.mulf %34, %35 : vector<2x64xf32>
    %37 = arith.addf %22, %36 : vector<2x64xf32>
    %c2_i32 = arith.constant 2 : i32
    %38 = arith.index_cast %c2_i32 : i32 to index
    %c0_23 = arith.constant 0 : index
    %c0_24 = arith.constant 0 : index
    %39 = vector.load %arg2[%38, %c0_23, %c0_24] : memref<8x2x8xf32, #tpu.memory_space<vmem>>, vector<1x2x8xf32>
    %40 = vector.shape_cast %39 : vector<1x2x8xf32> to vector<2x8xf32>
    %c0_25 = arith.constant 0 : index
    %c0_26 = arith.constant 0 : index
    %41 = vector.load %arg3[%c0_25, %c0_26] : memref<8x64xf32, #tpu.memory_space<vmem>>, vector<8x64xf32>
    %cst_27 = arith.constant dense<0.000000e+00> : vector<2x64xf32>
    %42 = tpu.matmul %40, %41, %cst_27 {dimension_numbers = #tpu.dot_dimension_numbers<[1], [0], [0], [1], [0, 0, 1, 1], [], []>} : vector<2x8xf32>, vector<8x64xf32>, vector<2x64xf32> -> vector<2x64xf32>
    %43 = vector.broadcast %3 : vector<1x64xf32> to vector<2x64xf32>
    %44 = arith.addf %42, %43 : vector<2x64xf32>
    %c0_28 = arith.constant 0 : index
    %c0_29 = arith.constant 0 : index
    %45 = vector.load %arg5[%c0_28, %c0_29] : memref<64x64xf32, #tpu.memory_space<vmem>>, vector<64x64xf32>
    %cst_30 = arith.constant dense<0.000000e+00> : vector<2x64xf32>
    %46 = tpu.matmul %37, %45, %cst_30 {dimension_numbers = #tpu.dot_dimension_numbers<[1], [0], [0], [1], [0, 0, 1, 1], [], []>} : vector<2x64xf32>, vector<64x64xf32>, vector<2x64xf32> -> vector<2x64xf32>
    %47 = arith.addf %44, %46 : vector<2x64xf32>
    %48 = math.tanh %47 : vector<2x64xf32>
    %49 = arith.subf %48, %37 : vector<2x64xf32>
    %50 = vector.broadcast %6 : vector<1x64xf32> to vector<2x64xf32>
    %51 = arith.mulf %49, %50 : vector<2x64xf32>
    %52 = arith.addf %37, %51 : vector<2x64xf32>
    %c3_i32 = arith.constant 3 : i32
    %53 = arith.index_cast %c3_i32 : i32 to index
    %c0_31 = arith.constant 0 : index
    %c0_32 = arith.constant 0 : index
    %54 = vector.load %arg2[%53, %c0_31, %c0_32] : memref<8x2x8xf32, #tpu.memory_space<vmem>>, vector<1x2x8xf32>
    %55 = vector.shape_cast %54 : vector<1x2x8xf32> to vector<2x8xf32>
    %c0_33 = arith.constant 0 : index
    %c0_34 = arith.constant 0 : index
    %56 = vector.load %arg3[%c0_33, %c0_34] : memref<8x64xf32, #tpu.memory_space<vmem>>, vector<8x64xf32>
    %cst_35 = arith.constant dense<0.000000e+00> : vector<2x64xf32>
    %57 = tpu.matmul %55, %56, %cst_35 {dimension_numbers = #tpu.dot_dimension_numbers<[1], [0], [0], [1], [0, 0, 1, 1], [], []>} : vector<2x8xf32>, vector<8x64xf32>, vector<2x64xf32> -> vector<2x64xf32>
    %58 = vector.broadcast %3 : vector<1x64xf32> to vector<2x64xf32>
    %59 = arith.addf %57, %58 : vector<2x64xf32>
    %c0_36 = arith.constant 0 : index
    %c0_37 = arith.constant 0 : index
    %60 = vector.load %arg5[%c0_36, %c0_37] : memref<64x64xf32, #tpu.memory_space<vmem>>, vector<64x64xf32>
    %cst_38 = arith.constant dense<0.000000e+00> : vector<2x64xf32>
    %61 = tpu.matmul %52, %60, %cst_38 {dimension_numbers = #tpu.dot_dimension_numbers<[1], [0], [0], [1], [0, 0, 1, 1], [], []>} : vector<2x64xf32>, vector<64x64xf32>, vector<2x64xf32> -> vector<2x64xf32>
    %62 = arith.addf %59, %61 : vector<2x64xf32>
    %63 = math.tanh %62 : vector<2x64xf32>
    %64 = arith.subf %63, %52 : vector<2x64xf32>
    %65 = vector.broadcast %6 : vector<1x64xf32> to vector<2x64xf32>
    %66 = arith.mulf %64, %65 : vector<2x64xf32>
    %67 = arith.addf %52, %66 : vector<2x64xf32>
    %c4_i32 = arith.constant 4 : i32
    %68 = arith.index_cast %c4_i32 : i32 to index
    %c0_39 = arith.constant 0 : index
    %c0_40 = arith.constant 0 : index
    %69 = vector.load %arg2[%68, %c0_39, %c0_40] : memref<8x2x8xf32, #tpu.memory_space<vmem>>, vector<1x2x8xf32>
    %70 = vector.shape_cast %69 : vector<1x2x8xf32> to vector<2x8xf32>
    %c0_41 = arith.constant 0 : index
    %c0_42 = arith.constant 0 : index
    %71 = vector.load %arg3[%c0_41, %c0_42] : memref<8x64xf32, #tpu.memory_space<vmem>>, vector<8x64xf32>
    %cst_43 = arith.constant dense<0.000000e+00> : vector<2x64xf32>
    %72 = tpu.matmul %70, %71, %cst_43 {dimension_numbers = #tpu.dot_dimension_numbers<[1], [0], [0], [1], [0, 0, 1, 1], [], []>} : vector<2x8xf32>, vector<8x64xf32>, vector<2x64xf32> -> vector<2x64xf32>
    %73 = vector.broadcast %3 : vector<1x64xf32> to vector<2x64xf32>
    %74 = arith.addf %72, %73 : vector<2x64xf32>
    %c0_44 = arith.constant 0 : index
    %c0_45 = arith.constant 0 : index
    %75 = vector.load %arg5[%c0_44, %c0_45] : memref<64x64xf32, #tpu.memory_space<vmem>>, vector<64x64xf32>
    %cst_46 = arith.constant dense<0.000000e+00> : vector<2x64xf32>
    %76 = tpu.matmul %67, %75, %cst_46 {dimension_numbers = #tpu.dot_dimension_numbers<[1], [0], [0], [1], [0, 0, 1, 1], [], []>} : vector<2x64xf32>, vector<64x64xf32>, vector<2x64xf32> -> vector<2x64xf32>
    %77 = arith.addf %74, %76 : vector<2x64xf32>
    %78 = math.tanh %77 : vector<2x64xf32>
    %79 = arith.subf %78, %67 : vector<2x64xf32>
    %80 = vector.broadcast %6 : vector<1x64xf32> to vector<2x64xf32>
    %81 = arith.mulf %79, %80 : vector<2x64xf32>
    %82 = arith.addf %67, %81 : vector<2x64xf32>
    %c5_i32 = arith.constant 5 : i32
    %83 = arith.index_cast %c5_i32 : i32 to index
    %c0_47 = arith.constant 0 : index
    %c0_48 = arith.constant 0 : index
    %84 = vector.load %arg2[%83, %c0_47, %c0_48] : memref<8x2x8xf32, #tpu.memory_space<vmem>>, vector<1x2x8xf32>
    %85 = vector.shape_cast %84 : vector<1x2x8xf32> to vector<2x8xf32>
    %c0_49 = arith.constant 0 : index
    %c0_50 = arith.constant 0 : index
    %86 = vector.load %arg3[%c0_49, %c0_50] : memref<8x64xf32, #tpu.memory_space<vmem>>, vector<8x64xf32>
    %cst_51 = arith.constant dense<0.000000e+00> : vector<2x64xf32>
    %87 = tpu.matmul %85, %86, %cst_51 {dimension_numbers = #tpu.dot_dimension_numbers<[1], [0], [0], [1], [0, 0, 1, 1], [], []>} : vector<2x8xf32>, vector<8x64xf32>, vector<2x64xf32> -> vector<2x64xf32>
    %88 = vector.broadcast %3 : vector<1x64xf32> to vector<2x64xf32>
    %89 = arith.addf %87, %88 : vector<2x64xf32>
    %c0_52 = arith.constant 0 : index
    %c0_53 = arith.constant 0 : index
    %90 = vector.load %arg5[%c0_52, %c0_53] : memref<64x64xf32, #tpu.memory_space<vmem>>, vector<64x64xf32>
    %cst_54 = arith.constant dense<0.000000e+00> : vector<2x64xf32>
    %91 = tpu.matmul %82, %90, %cst_54 {dimension_numbers = #tpu.dot_dimension_numbers<[1], [0], [0], [1], [0, 0, 1, 1], [], []>} : vector<2x64xf32>, vector<64x64xf32>, vector<2x64xf32> -> vector<2x64xf32>
    %92 = arith.addf %89, %91 : vector<2x64xf32>
    %93 = math.tanh %92 : vector<2x64xf32>
    %94 = arith.subf %93, %82 : vector<2x64xf32>
    %95 = vector.broadcast %6 : vector<1x64xf32> to vector<2x64xf32>
    %96 = arith.mulf %94, %95 : vector<2x64xf32>
    %97 = arith.addf %82, %96 : vector<2x64xf32>
    %c6_i32 = arith.constant 6 : i32
    %98 = arith.index_cast %c6_i32 : i32 to index
    %c0_55 = arith.constant 0 : index
    %c0_56 = arith.constant 0 : index
    %99 = vector.load %arg2[%98, %c0_55, %c0_56] : memref<8x2x8xf32, #tpu.memory_space<vmem>>, vector<1x2x8xf32>
    %100 = vector.shape_cast %99 : vector<1x2x8xf32> to vector<2x8xf32>
    %c0_57 = arith.constant 0 : index
    %c0_58 = arith.constant 0 : index
    %101 = vector.load %arg3[%c0_57, %c0_58] : memref<8x64xf32, #tpu.memory_space<vmem>>, vector<8x64xf32>
    %cst_59 = arith.constant dense<0.000000e+00> : vector<2x64xf32>
    %102 = tpu.matmul %100, %101, %cst_59 {dimension_numbers = #tpu.dot_dimension_numbers<[1], [0], [0], [1], [0, 0, 1, 1], [], []>} : vector<2x8xf32>, vector<8x64xf32>, vector<2x64xf32> -> vector<2x64xf32>
    %103 = vector.broadcast %3 : vector<1x64xf32> to vector<2x64xf32>
    %104 = arith.addf %102, %103 : vector<2x64xf32>
    %c0_60 = arith.constant 0 : index
    %c0_61 = arith.constant 0 : index
    %105 = vector.load %arg5[%c0_60, %c0_61] : memref<64x64xf32, #tpu.memory_space<vmem>>, vector<64x64xf32>
    %cst_62 = arith.constant dense<0.000000e+00> : vector<2x64xf32>
    %106 = tpu.matmul %97, %105, %cst_62 {dimension_numbers = #tpu.dot_dimension_numbers<[1], [0], [0], [1], [0, 0, 1, 1], [], []>} : vector<2x64xf32>, vector<64x64xf32>, vector<2x64xf32> -> vector<2x64xf32>
    %107 = arith.addf %104, %106 : vector<2x64xf32>
    %108 = math.tanh %107 : vector<2x64xf32>
    %109 = arith.subf %108, %97 : vector<2x64xf32>
    %110 = vector.broadcast %6 : vector<1x64xf32> to vector<2x64xf32>
    %111 = arith.mulf %109, %110 : vector<2x64xf32>
    %112 = arith.addf %97, %111 : vector<2x64xf32>
    %c7_i32 = arith.constant 7 : i32
    %113 = arith.index_cast %c7_i32 : i32 to index
    %c0_63 = arith.constant 0 : index
    %c0_64 = arith.constant 0 : index
    %114 = vector.load %arg2[%113, %c0_63, %c0_64] : memref<8x2x8xf32, #tpu.memory_space<vmem>>, vector<1x2x8xf32>
    %115 = vector.shape_cast %114 : vector<1x2x8xf32> to vector<2x8xf32>
    %c0_65 = arith.constant 0 : index
    %c0_66 = arith.constant 0 : index
    %116 = vector.load %arg3[%c0_65, %c0_66] : memref<8x64xf32, #tpu.memory_space<vmem>>, vector<8x64xf32>
    %cst_67 = arith.constant dense<0.000000e+00> : vector<2x64xf32>
    %117 = tpu.matmul %115, %116, %cst_67 {dimension_numbers = #tpu.dot_dimension_numbers<[1], [0], [0], [1], [0, 0, 1, 1], [], []>} : vector<2x8xf32>, vector<8x64xf32>, vector<2x64xf32> -> vector<2x64xf32>
    %118 = vector.broadcast %3 : vector<1x64xf32> to vector<2x64xf32>
    %119 = arith.addf %117, %118 : vector<2x64xf32>
    %c0_68 = arith.constant 0 : index
    %c0_69 = arith.constant 0 : index
    %120 = vector.load %arg5[%c0_68, %c0_69] : memref<64x64xf32, #tpu.memory_space<vmem>>, vector<64x64xf32>
    %cst_70 = arith.constant dense<0.000000e+00> : vector<2x64xf32>
    %121 = tpu.matmul %112, %120, %cst_70 {dimension_numbers = #tpu.dot_dimension_numbers<[1], [0], [0], [1], [0, 0, 1, 1], [], []>} : vector<2x64xf32>, vector<64x64xf32>, vector<2x64xf32> -> vector<2x64xf32>
    %122 = arith.addf %119, %121 : vector<2x64xf32>
    %123 = math.tanh %122 : vector<2x64xf32>
    %124 = arith.subf %123, %112 : vector<2x64xf32>
    %125 = vector.broadcast %6 : vector<1x64xf32> to vector<2x64xf32>
    %126 = arith.mulf %124, %125 : vector<2x64xf32>
    %127 = arith.addf %112, %126 : vector<2x64xf32>
    %c8_i32 = arith.constant 8 : i32
    %c0_71 = arith.constant 0 : index
    %c0_72 = arith.constant 0 : index
    %128 = vector.load %arg10[%c0_71, %c0_72] : memref<2x64xf32, #tpu.memory_space<vmem>>, vector<2x64xf32>
    tpu.vector_store %arg10[%c0_71, %c0_72], %127 {strides = array<i32>} : memref<2x64xf32, #tpu.memory_space<vmem>>, vector<2x64xf32>,
    %c0_i32_73 = arith.constant 0 : i32
    %129 = arith.cmpi eq, %arg1, %c0_i32_73 : i32
    %130 = arith.extui %129 : i1 to i32
    %c0_i32_74 = arith.constant 0 : i32
    %131 = arith.cmpi ne, %130, %c0_i32_74 : i32
    scf.if %131 {
      %c0_75 = arith.constant 0 : index
      %c0_76 = arith.constant 0 : index
      %132 = vector.load %arg10[%c0_75, %c0_76] : memref<2x64xf32, #tpu.memory_space<vmem>>, vector<2x64xf32>
      %c0_77 = arith.constant 0 : index
      %c0_78 = arith.constant 0 : index
      %133 = vector.load %arg7[%c0_77, %c0_78] : memref<64x1xf32, #tpu.memory_space<vmem>>, vector<64x1xf32>
      %cst_79 = arith.constant dense<0.000000e+00> : vector<2x1xf32>
      %134 = tpu.matmul %132, %133, %cst_79 {dimension_numbers = #tpu.dot_dimension_numbers<[1], [0], [0], [1], [0, 0, 1, 1], [], []>} : vector<2x64xf32>, vector<64x1xf32>, vector<2x1xf32> -> vector<2x1xf32>
      %c0_80 = arith.constant 0 : index
      %c0_81 = arith.constant 0 : index
      %135 = vector.load %arg8[%c0_80, %c0_81] : memref<1x1xf32, #tpu.memory_space<vmem>>, vector<1x1xf32>
      %136 = vector.broadcast %135 : vector<1x1xf32> to vector<2x1xf32>
      %137 = arith.addf %134, %136 : vector<2x1xf32>
      %c0_82 = arith.constant 0 : index
      %c0_83 = arith.constant 0 : index
      %138 = vector.load %arg9[%c0_82, %c0_83] : memref<2x1xf32, #tpu.memory_space<vmem>>, vector<2x1xf32>
      tpu.vector_store %arg9[%c0_82, %c0_83], %137 {strides = array<i32>} : memref<2x1xf32, #tpu.memory_space<vmem>>, vector<2x1xf32>,
    } else {
    }
    return
  }
  func.func @transform_0(%arg0: i32, %arg1: i32) -> (i32, i32, i32) {
    %c0_i32 = arith.constant 0 : i32
    %c0_i32_0 = arith.constant 0 : i32
    return %arg1, %arg0, %c0_i32 : i32, i32, i32
  }
  func.func @transform_1(%arg0: i32, %arg1: i32) -> (i32, i32) {
    %c0_i32 = arith.constant 0 : i32
    %c0_i32_0 = arith.constant 0 : i32
    %c0_i32_1 = arith.constant 0 : i32
    return %c0_i32, %c0_i32_0 : i32, i32
  }
  func.func @transform_2(%arg0: i32, %arg1: i32) -> (i32, i32) {
    %c0_i32 = arith.constant 0 : i32
    %c0_i32_0 = arith.constant 0 : i32
    %c0_i32_1 = arith.constant 0 : i32
    return %c0_i32, %c0_i32_0 : i32, i32
  }
  func.func @transform_3(%arg0: i32, %arg1: i32) -> (i32, i32) {
    %c0_i32 = arith.constant 0 : i32
    %c0_i32_0 = arith.constant 0 : i32
    %c0_i32_1 = arith.constant 0 : i32
    return %c0_i32, %c0_i32_0 : i32, i32
  }
  func.func @transform_4(%arg0: i32, %arg1: i32) -> (i32, i32) {
    %c0_i32 = arith.constant 0 : i32
    %c0_i32_0 = arith.constant 0 : i32
    %c0_i32_1 = arith.constant 0 : i32
    return %c0_i32, %c0_i32_0 : i32, i32
  }
  func.func @transform_5(%arg0: i32, %arg1: i32) -> (i32, i32) {
    %c0_i32 = arith.constant 0 : i32
    %c0_i32_0 = arith.constant 0 : i32
    %c0_i32_1 = arith.constant 0 : i32
    return %c0_i32, %c0_i32_0 : i32, i32
  }
  func.func @transform_6(%arg0: i32, %arg1: i32) -> (i32, i32) {
    %c0_i32 = arith.constant 0 : i32
    %c0_i32_0 = arith.constant 0 : i32
    %c0_i32_1 = arith.constant 0 : i32
    return %c0_i32, %c0_i32_0 : i32, i32
  }
  func.func @transform_7(%arg0: i32, %arg1: i32) -> (i32, i32) {
    %c0_i32 = arith.constant 0 : i32
    %c0_i32_0 = arith.constant 0 : i32
    return %arg0, %c0_i32 : i32, i32
  }
}

</mosaic_0001>

<bundles_post_ra>
// kernel: tpu_custom_call.1
= control target key start
LH: loop header
LB: loop body
LE: loop exit
PB: predicated region body
PF: predicated region fallthrough
CT: control target
= control target key end

     0   :  { %s2264_s0 = inlined_call_operand.vmem [shape: f32[8,2,8], index: 0, kind: input, shape index: {}]   ;;  %s2265_s1 = inlined_call_operand.hbm [shape: f32[8,64], index: 1, kind: input, shape index: {}]   ;;  %s2266_s2 = inlined_call_operand.hbm [shape: f32[1,64], index: 2, kind: input, shape index: {}]   ;;  %s2267_s3 = inlined_call_operand.vmem [shape: f32[64,64], index: 3, kind: input, shape index: {}]   ;;  %s2268_s4 = inlined_call_operand.vmem [shape: f32[1,64], index: 4, kind: input, shape index: {}]   ;;  %s2269_s5 = inlined_call_operand.vmem [shape: f32[64,1], index: 5, kind: input, shape index: {}]   ;;  %s2270_s6 = inlined_call_operand.<no memory space> [shape: f32[1,1], index: 6, kind: input, shape index: {}]   ;;  %s2271_s7 = inlined_call_operand.vmem [shape: f32[2,1], index: 7, kind: output, shape index: {}]  }
   0x1   :  { %v12_v0 = vstv %s2270_s6 }
   0x2   :  { %13 = vst [vmem:[#allocation3] sm:$0x1] %v12_v0 }
   0x3   :  { %14 = vsyncpa [#allocation5], 0 }
   0x4   :  { %15 = vsyncpa [#allocation7], 0  ;;  %s1946_s26 = smov [#allocation4]   ;;  %s1947_s28 = smov [#allocation6]  }
   0x5   :  { %s24_s27 = sshll.u32 %s1946_s26, 4  ;;  %s34_s29 = sshll.u32 %s1947_s28, 4  ;;  %s25_s27 = int_to_ptr.vmem [resolvable:$true] %s24_s27  ;;  %s35_s29 = int_to_ptr.vmem [resolvable:$true] %s34_s29 }
   0x6   :  { %s1898_s9 = scalar_lea.hbm %s2265_s1, 128 }
   0x7   :  { %p1899_p0 = scmp.ne.s32.totalorder %s2265_s1, %s1898_s9  ;;  %p1902_p1 = scmp.lt.u32.totalorder %s1898_s9, %s2265_s1 }
   0x9   :  { %p1904_p2 = pnand %p1902_p1, %p1899_p0 }
   0xb   :  { %1907 = shalt.err (!%p1904_p2)
}
   0xc   :  { %s1908_s6 = scalar_lea.vmem %s25_s27, 128  ;;  %p1913_p4 = scmp.lt.s32.totalorder %s25_s27, %s25_s27 }
   0xd   :  { %p1909_p3 = scmp.ne.s32.totalorder %s25_s27, %s1908_s6  ;;  %p1914_p5 = scmp.lt.s32.totalorder %s1908_s6, %s1908_s6 }
   0xf   :  { %p1915_p6 = por %p1914_p5, %p1913_p4 }
  0x11   :  { %p1916_p7 = pnand %p1915_p6, %p1909_p3 }
  0x13   :  { %1919 = shalt.err (!%p1916_p7)
}
  0x14   :  { %27 = dma.hbm_to_vmem [thread:$0]  %s2265_s1, 128, %s25_s27, [#allocation5]  }
  0x15   :  { %s1920_s18 = scalar_lea.hbm %s2266_s2, 16 }
  0x16   :  { %p1921_p8 = scmp.ne.s32.totalorder %s2266_s2, %s1920_s18  ;;  %p1924_p9 = scmp.lt.u32.totalorder %s1920_s18, %s2266_s2 }
  0x18   :  { %p1926_p10 = pnand %p1924_p9, %p1921_p8 }
  0x1a   :  { %1929 = shalt.err (!%p1926_p10)
}
  0x1b   :  { %s1930_s23 = scalar_lea.vmem %s35_s29, 16  ;;  %s1934_s24 = scalar_lea.vmem %s35_s29, 32 }
  0x1c   :  { %p1931_p11 = scmp.ne.s32.totalorder %s35_s29, %s1930_s23  ;;  %p1935_p12 = scmp.lt.s32.totalorder %s35_s29, %s35_s29 }
  0x1d   :  { %p1936_p13 = scmp.lt.s32.totalorder %s1934_s24, %s1930_s23 }
  0x1f   :  { %p1937_p0 = por %p1936_p13, %p1935_p12 }
  0x21   :  { %p1938_p1 = pnand %p1937_p0, %p1931_p11 }
  0x23   :  { %1941 = shalt.err (!%p1938_p1)
}
  0x24   :  { %37 = dma.hbm_to_vmem [thread:$0]  %s2266_s2, 16, %s35_s29, [#allocation7]  }
  0x25   :  { %1942 = dma.done.wait [#allocation5], 128  }
  0x26   :  { %1943 = vsyncadd [#allocation5], 4294967168 }
  0x27   :  { %1944 = dma.done.wait [#allocation7], 16  }
  0x28   :  { %1945 = vsyncadd [#allocation7], 4294967280  ;;  %v1948_v1 = vmov 0.0   ;;  %vm1949_vm0 = vmmov 0   ;;  %vm56_vm1 = vcmask 517120   ;;  %vm71_vm2 = vcmask 64512  }
  0x29   :  { %1534 = vmatprep.subr.mxu0 %v1948_v1  ;;  %1536 = vmatprep.mubr.msk.f32.mxu0 %vm1949_vm0, %v1948_v1  ;;  %57 = vst.msk [vmem:[#allocation2] sm:$0x3] %vm56_vm1, %v1948_v1  ;;  %v2026_v2 = vld [vmem:[#allocation4] sm:$0xff]  ;;  %v63_v3 = vld [vmem:[%s2264_s0] sm:$0x3]  ;;  %v147_v6 = vld [vmem:[%s2267_s3 + $0x10] sm:$0xff]  ;;  %v231_v22 = vlaneseq }
  0x2a   :  { %1558 = vmatprep.subr.mxu1 %v1948_v1  ;;  %1560 = vmatprep.mubr.msk.f32.mxu1 %vm1949_vm0, %v1948_v1  ;;  %v145_v4 = vld [vmem:[%s2267_s3] sm:$0xff]  ;;  %v146_v5 = vld [vmem:[%s2267_s3 + $0x8] sm:$0xff]  ;;  %v148_v7 = vld [vmem:[%s2267_s3 + $0x18] sm:$0xff]  ;;  %v1950_v8 = vmov 0.0|0.0   ;;  %vm153_vm3 = vcmask 523264   ;;  %vm1403_vm4 = vcmask 1024  }
  0x2b   :  { %1535 = vmatpush3.msra.mxu0 %v2026_v2  ;;  %1559 = vmatpush3.msra.mxu1 %v2026_v2  ;;  %v2047_v9 = vpack.c.bf16 %v146_v5, %v145_v4  ;;  %v2053_v10 = vpack.c.bf16 %v148_v7, %v147_v6  ;;  %v149_v11 = vld [vmem:[%s2267_s3 + $0x20] sm:$0xff]  ;;  %v150_v12 = vld [vmem:[%s2267_s3 + $0x28] sm:$0xff]  ;;  %v151_v14 = vld [vmem:[%s2267_s3 + $0x30] sm:$0xff]  ;;  %v232_v25 = vshrl.u32 %v231_v22, 7 }
  0x2c   :  { %1745 = vmatprep.subr.bf16.mxu0 %v1950_v8  ;;  %1537 = vmatmul.mubr.msk.f32.vlgmr.msra.gmra.mrb[0].mxu0 %vm71_vm2, %v63_v3  ;;  %v2063_v13 = vpack.c.bf16 %v150_v12, %v149_v11  ;;  %v152_v15 = vld [vmem:[%s2267_s3 + $0x38] sm:$0xff]  ;;  %v1414_v18 = vld [vmem:[%s2264_s0 + $0x2] sm:$0x3]  ;;  %v59_v19 = vld [vmem:[%s2268_s4] sm:$0x1] }
  0x2d   :  { %1555 = vmatprep.mubr.msk.f32.mxu0 %vm1949_vm0, %v1948_v1  ;;  %1757 = vmatprep.subr.bf16.mxu1 %v1950_v8  ;;  %v2073_v16 = vpack.c.bf16 %v152_v15, %v151_v14  ;;  %v2106_v20 = vld [vmem:[#allocation6] ss:$0 sm:$0xff]  ;;  %1880 = vrcp.f32 %v59_v19  ;;  %v233_v26 = vsub.s32 0, %v232_v25  ;;  %v1417_v33 = vld [vmem:[%s2264_s0 + $0x4] sm:$0x3] }
  0x2e   :  { %1747 = vmatpush3.bf16.msra.mxu0 %v2047_v9  ;;  %1561 = vmatmul.mubr.msk.f32.vlgmr.msra.gmra.mrb[0].mxu1 %vm71_vm2, %v1414_v18  ;;  %v1420_v43 = vld [vmem:[%s2264_s0 + $0x6] sm:$0x3]  ;;  %v1423_v52 = vld [vmem:[%s2264_s0 + $0x8] sm:$0x3]  ;;  %v1426_v62 = vld [vmem:[%s2264_s0 + $0xa] sm:$0x3] }
  0x2f   :  { %1748 = vmatprep.subr.bf16.mxu0 %v1950_v8  ;;  %1759 = vmatpush3.bf16.msra.mxu1 %v2047_v9  ;;  %v1429_v12 = vld [vmem:[%s2264_s0 + $0xc] sm:$0x3]  ;;  %v1432_v22 = vld [vmem:[%s2264_s0 + $0xe] sm:$0x3] }
  0x30   :  { %v62_v17 = vld [vmem:[#allocation2] sm:$0x3]  ;;  %1579 = vmatprep.mubr.msk.f32.mxu1 %vm1949_vm0, %v1948_v1  ;;  %1760 = vmatprep.subr.bf16.mxu1 %v1950_v8 }
  0x32   :  { %1750 = vmatpush3.bf16.msra.mxu0 %v2053_v10 }
  0x33   :  { %1751 = vmatprep.subr.bf16.mxu0 %v1950_v8  ;;  %1762 = vmatpush3.bf16.msra.mxu1 %v2053_v10 }
  0x34   :  { %1763 = vmatprep.subr.bf16.mxu1 %v1950_v8 }
  0x36   :  { %1753 = vmatpush3.bf16.msra.mxu0 %v2063_v13 }
  0x37   :  { %1754 = vmatprep.subr.bf16.mxu0 %v1950_v8  ;;  %1765 = vmatpush3.bf16.msra.mxu1 %v2063_v13  ;;  %v1881_v27 = vpop.eup %1880 }
  0x38   :  { %1766 = vmatprep.subr.bf16.mxu1 %v1950_v8  ;;  %v2109_v28 = vrot.slane %v1881_v27, %v233_v26 }
  0x3a   :  { %1756 = vmatpush3.bf16.msra.mxu0 %v2073_v16 }
  0x3b   :  { %1769 = vmatprep.subr.bf16.mxu0 %v1950_v8  ;;  %1768 = vmatpush3.bf16.msra.mxu1 %v2073_v16 }
  0x3c   :  { %1582 = vmatprep.subr.mxu1 %v1948_v1 }
  0x3d   :  { %1556 = vmatmul.mubr.msk.f32.vlgmr.msra.gmra.mrb[0].mxu0 %vm153_vm3, %v62_v17 }
  0x3e   :  { %1771 = vmatpush3.bf16.msra.mxu0 %v2047_v9  ;;  %1603 = vmatprep.mubr.msk.f32.mxu0 %vm1949_vm0, %v1948_v1 }
  0x3f   :  { %1772 = vmatprep.subr.bf16.mxu0 %v1950_v8 }
  0x42   :  { %1774 = vmatpush3.bf16.msra.mxu0 %v2053_v10 }
  0x43   :  { %1775 = vmatprep.subr.bf16.mxu0 %v1950_v8 }
  0x46   :  { %1777 = vmatpush3.bf16.msra.mxu0 %v2063_v13 }
  0x47   :  { %1778 = vmatprep.subr.bf16.mxu0 %v1950_v8 }
  0x4a   :  { %1780 = vmatpush3.bf16.msra.mxu0 %v2073_v16 }
  0x4b   :  { %1793 = vmatprep.subr.bf16.mxu0 %v1950_v8 }
 0x110   :  { %v223_v21 = vpop.f32.mrb[0].mxu0 }
 0x111   :  { %v1853_v23 = vadd.f32 %v2106_v20, %v223_v21  ;;  %v1557_v24 = vpop.f32.mrb[1].mxu0 }
 0x113   :  { %1882 = vtanh.f32 %v1853_v23 }
 0x11d   :  { %v1883_v29 = vpop.eup %1882 }
 0x11e   :  { %v229_v30 = vsub.f32 %v1883_v29, %v62_v17  ;;  %v1317_v29 = vld [vmem:[%s2269_s5 + $0x10] sm:$0xff] }
 0x120   :  { %v236_v31 = vmul.f32 %v2109_v28, %v229_v30  ;;  %v1318_v30 = vld [vmem:[%s2269_s5 + $0x18] sm:$0xff] }
 0x122   :  { %v237_v32 = vadd.f32 %v236_v31, %v62_v17  ;;  %v1845_v31 = vpack.c.bf16 %v1318_v30, %v1317_v29 }
 0x124   :  { %1580 = vmatmul.mubr.msk.f32.vlgmr.msra.gmra.mrb[0].mxu1 %vm153_vm3, %v237_v32 }
 0x125   :  { %1583 = vmatpush3.msra.mxu1 %v2026_v2  ;;  %1584 = vmatprep.mubr.msk.f32.mxu1 %vm1949_vm0, %v1948_v1 }
 0x126   :  { %1606 = vmatprep.subr.mxu1 %v1948_v1 }
 0x128   :  { %1585 = vmatmul.mubr.msk.f32.vlgmr.msra.gmra.mrb[2].mxu1 %vm71_vm2, %v1417_v33  ;;  %v1320_v33 = vld [vmem:[%s2269_s5 + $0x28] sm:$0xff] }
 0x129   :  { %1607 = vmatpush3.msra.mxu1 %v2026_v2  ;;  %1608 = vmatprep.mubr.msk.f32.mxu1 %vm1949_vm0, %v1948_v1 }
 0x12a   :  { %1781 = vmatprep.subr.bf16.mxu1 %v1950_v8 }
 0x12c   :  { %1609 = vmatmul.mubr.msk.f32.vlgmr.msra.gmra.mrb[4].mxu1 %vm71_vm2, %v1420_v43 }
 0x12d   :  { %1783 = vmatpush3.bf16.msra.mxu1 %v2047_v9  ;;  %1627 = vmatprep.mubr.msk.f32.mxu1 %vm1949_vm0, %v1948_v1 }
 0x12e   :  { %1784 = vmatprep.subr.bf16.mxu1 %v1950_v8 }
 0x131   :  { %1786 = vmatpush3.bf16.msra.mxu1 %v2053_v10 }
 0x132   :  { %1787 = vmatprep.subr.bf16.mxu1 %v1950_v8 }
 0x135   :  { %1789 = vmatpush3.bf16.msra.mxu1 %v2063_v13 }
 0x136   :  { %1790 = vmatprep.subr.bf16.mxu1 %v1950_v8 }
 0x139   :  { %1792 = vmatpush3.bf16.msra.mxu1 %v2073_v16 }
 0x13a   :  { %1630 = vmatprep.subr.mxu1 %v1948_v1 }
 0x1f7   :  { %v382_v34 = vpop.f32.mrb[0].mxu1 }
 0x1f8   :  { %v1854_v35 = vadd.f32 %v2106_v20, %v382_v34  ;;  %v1581_v36 = vpop.f32.mrb[1].mxu1 }
 0x1f9   :  { %v1322_v36 = vld [vmem:[%s2269_s5 + $0x38] sm:$0xff] }
 0x1fa   :  { %1884 = vtanh.f32 %v1854_v35  ;;  %v1321_v35 = vld [vmem:[%s2269_s5 + $0x30] sm:$0xff] }
 0x1fb   :  { %v462_v41 = vpop.f32.mrb[2].mxu1 }
 0x1fc   :  { %v1586_v42 = vpop.f32.mrb[3].mxu1  ;;  %v463_v44 = vadd.f32 %v2106_v20, %v462_v41 }
 0x204   :  { %v1885_v37 = vpop.eup %1884 }
 0x205   :  { %v388_v38 = vsub.f32 %v1885_v37, %v237_v32  ;;  %v1851_v37 = vpack.c.bf16 %v1322_v36, %v1321_v35 }
 0x207   :  { %v389_v39 = vmul.f32 %v388_v38, %v2109_v28 }
 0x209   :  { %v390_v40 = vadd.f32 %v389_v39, %v237_v32  ;;  %v1319_v32 = vld [vmem:[%s2269_s5 + $0x20] sm:$0xff] }
 0x20a   :  { %v1848_v34 = vpack.c.bf16 %v1320_v33, %v1319_v32 }
 0x20b   :  { %1604 = vmatmul.mubr.msk.f32.vlgmr.msra.gmra.mrb[2].mxu0 %vm153_vm3, %v390_v40 }
 0x20c   :  { %1795 = vmatpush3.bf16.msra.mxu0 %v2047_v9  ;;  %1651 = vmatprep.mubr.msk.f32.mxu0 %vm1949_vm0, %v1948_v1 }
 0x20d   :  { %1796 = vmatprep.subr.bf16.mxu0 %v1950_v8 }
 0x210   :  { %1798 = vmatpush3.bf16.msra.mxu0 %v2053_v10 }
 0x211   :  { %1799 = vmatprep.subr.bf16.mxu0 %v1950_v8 }
 0x214   :  { %1801 = vmatpush3.bf16.msra.mxu0 %v2063_v13 }
 0x215   :  { %1802 = vmatprep.subr.bf16.mxu0 %v1950_v8 }
 0x218   :  { %1804 = vmatpush3.bf16.msra.mxu0 %v2073_v16 }
 0x219   :  { %1678 = vmatprep.subr.mxu0 %v1948_v1 }
 0x2de   :  { %v535_v45 = vpop.f32.mrb[2].mxu0 }
 0x2df   :  { %v539_v46 = vadd.f32 %v535_v45, %v463_v44  ;;  %v1605_v47 = vpop.f32.mrb[3].mxu0 }
 0x2e1   :  { %1886 = vtanh.f32 %v539_v46  ;;  %v1435_v46 = vld [vmem:[#allocation3] ss:$0 sm:$0xff] }
 0x2eb   :  { %v1887_v48 = vpop.eup %1886 }
 0x2ec   :  { %v541_v49 = vsub.f32 %v1887_v48, %v390_v40 }
 0x2ee   :  { %v542_v50 = vmul.f32 %v541_v49, %v2109_v28 }
 0x2f0   :  { %v543_v51 = vadd.f32 %v542_v50, %v390_v40 }
 0x2f2   :  { %1628 = vmatmul.mubr.msk.f32.vlgmr.msra.gmra.mrb[4].mxu1 %vm153_vm3, %v543_v51 }
 0x2f3   :  { %1631 = vmatpush3.msra.mxu1 %v2026_v2  ;;  %1632 = vmatprep.mubr.msk.f32.mxu1 %vm1949_vm0, %v1948_v1 }
 0x2f4   :  { %1654 = vmatprep.subr.mxu1 %v1948_v1 }
 0x2f6   :  { %1633 = vmatmul.mubr.msk.f32.vlgmr.msra.gmra.mrb[6].mxu1 %vm71_vm2, %v1423_v52 }
 0x2f7   :  { %1655 = vmatpush3.msra.mxu1 %v2026_v2  ;;  %1656 = vmatprep.mubr.msk.f32.mxu1 %vm1949_vm0, %v1948_v1 }
 0x2f8   :  { %1805 = vmatprep.subr.bf16.mxu1 %v1950_v8 }
 0x2fa   :  { %1657 = vmatmul.mubr.msk.f32.vlgmr.msra.gmra.mrb[8].mxu1 %vm71_vm2, %v1426_v62 }
 0x2fb   :  { %1807 = vmatpush3.bf16.msra.mxu1 %v2047_v9  ;;  %1675 = vmatprep.mubr.msk.f32.mxu1 %vm1949_vm0, %v1948_v1 }
 0x2fc   :  { %1808 = vmatprep.subr.bf16.mxu1 %v1950_v8 }
 0x2ff   :  { %1810 = vmatpush3.bf16.msra.mxu1 %v2053_v10 }
 0x300   :  { %1811 = vmatprep.subr.bf16.mxu1 %v1950_v8 }
 0x303   :  { %1813 = vmatpush3.bf16.msra.mxu1 %v2063_v13 }
 0x304   :  { %1814 = vmatprep.subr.bf16.mxu1 %v1950_v8 }
 0x307   :  { %1816 = vmatpush3.bf16.msra.mxu1 %v2073_v16 }
 0x308   :  { %1702 = vmatprep.subr.mxu1 %v1948_v1 }
 0x3c5   :  { %v688_v53 = vpop.f32.mrb[4].mxu1 }
 0x3c6   :  { %v1857_v54 = vadd.f32 %v2106_v20, %v688_v53  ;;  %v1629_v55 = vpop.f32.mrb[5].mxu1 }
 0x3c8   :  { %1888 = vtanh.f32 %v1857_v54 }
 0x3c9   :  { %v768_v60 = vpop.f32.mrb[6].mxu1 }
 0x3ca   :  { %v1634_v61 = vpop.f32.mrb[7].mxu1  ;;  %v769_v63 = vadd.f32 %v2106_v20, %v768_v60 }
 0x3d2   :  { %v1889_v56 = vpop.eup %1888 }
 0x3d3   :  { %v694_v57 = vsub.f32 %v1889_v56, %v543_v51 }
 0x3d5   :  { %v695_v58 = vmul.f32 %v694_v57, %v2109_v28 }
 0x3d7   :  { %v696_v59 = vadd.f32 %v695_v58, %v543_v51 }
 0x3d9   :  { %1652 = vmatmul.mubr.msk.f32.vlgmr.msra.gmra.mrb[4].mxu0 %vm153_vm3, %v696_v59 }
 0x3da   :  { %1679 = vmatpush3.msra.mxu0 %v2026_v2  ;;  %1680 = vmatprep.mubr.msk.f32.mxu0 %vm1949_vm0, %v1948_v1 }
 0x3db   :  { %1817 = vmatprep.subr.bf16.mxu0 %v1950_v8 }
 0x3dd   :  { %1681 = vmatmul.mubr.msk.f32.vlgmr.msra.gmra.mrb[6].mxu0 %vm71_vm2, %v1429_v12 }
 0x3de   :  { %1819 = vmatpush3.bf16.msra.mxu0 %v2047_v9  ;;  %1699 = vmatprep.mubr.msk.f32.mxu0 %vm1949_vm0, %v1948_v1 }
 0x3df   :  { %1820 = vmatprep.subr.bf16.mxu0 %v1950_v8 }
 0x3e2   :  { %1822 = vmatpush3.bf16.msra.mxu0 %v2053_v10 }
 0x3e3   :  { %1823 = vmatprep.subr.bf16.mxu0 %v1950_v8 }
 0x3e6   :  { %1825 = vmatpush3.bf16.msra.mxu0 %v2063_v13 }
 0x3e7   :  { %1826 = vmatprep.subr.bf16.mxu0 %v1950_v8 }
 0x3ea   :  { %1828 = vmatpush3.bf16.msra.mxu0 %v2073_v16 }
 0x3eb   :  { %1841 = vmatprep.subr.bf16.mxu0 %v1950_v8 }
 0x4ac   :  { %v841_v0 = vpop.f32.mrb[4].mxu0 }
 0x4ad   :  { %v845_v3 = vadd.f32 %v841_v0, %v769_v63  ;;  %v1653_v4 = vpop.f32.mrb[5].mxu0 }
 0x4af   :  { %1890 = vtanh.f32 %v845_v3 }
 0x4b9   :  { %v1891_v5 = vpop.eup %1890 }
 0x4ba   :  { %v847_v6 = vsub.f32 %v1891_v5, %v696_v59 }
 0x4bc   :  { %v848_v7 = vmul.f32 %v847_v6, %v2109_v28 }
 0x4be   :  { %v849_v11 = vadd.f32 %v848_v7, %v696_v59 }
 0x4c0   :  { %1676 = vmatmul.mubr.msk.f32.vlgmr.msra.gmra.mrb[8].mxu1 %vm153_vm3, %v849_v11 }
 0x4c1   :  { %1703 = vmatpush3.msra.mxu1 %v2026_v2  ;;  %1704 = vmatprep.mubr.msk.f32.mxu1 %vm1949_vm0, %v1948_v1 }
 0x4c2   :  { %1829 = vmatprep.subr.bf16.mxu1 %v1950_v8 }
 0x4c4   :  { %1705 = vmatmul.mubr.msk.f32.vlgmr.msra.gmra.mrb[10].mxu1 %vm71_vm2, %v1432_v22 }
 0x4c5   :  { %1831 = vmatpush3.bf16.msra.mxu1 %v2047_v9  ;;  %1723 = vmatprep.mubr.msk.f32.mxu1 %vm1949_vm0, %v1948_v1 }
 0x4c6   :  { %1832 = vmatprep.subr.bf16.mxu1 %v1950_v8 }
 0x4c9   :  { %1834 = vmatpush3.bf16.msra.mxu1 %v2053_v10  ;;  %v1315_v10 = vld [vmem:[%s2269_s5] sm:$0xff] }
 0x4ca   :  { %1835 = vmatprep.subr.bf16.mxu1 %v1950_v8 }
 0x4cd   :  { %1837 = vmatpush3.bf16.msra.mxu1 %v2063_v13  ;;  %v1316_v13 = vld [vmem:[%s2269_s5 + $0x8] sm:$0xff] }
 0x4ce   :  { %1838 = vmatprep.subr.bf16.mxu1 %v1950_v8 }
 0x4d1   :  { %1840 = vmatpush3.bf16.msra.mxu1 %v2073_v16  ;;  %v1842_v16 = vpack.c.bf16 %v1316_v13, %v1315_v10 }
 0x593   :  { %v994_v2 = vpop.f32.mrb[8].mxu1 }
 0x594   :  { %v1860_v14 = vadd.f32 %v2106_v20, %v994_v2  ;;  %v1677_v15 = vpop.f32.mrb[9].mxu1 }
 0x596   :  { %1892 = vtanh.f32 %v1860_v14 }
 0x5a0   :  { %v1893_v17 = vpop.eup %1892 }
 0x5a1   :  { %v1000_v18 = vsub.f32 %v1893_v17, %v849_v11 }
 0x5a3   :  { %v1001_v19 = vmul.f32 %v1000_v18, %v2109_v28 }
 0x5a5   :  { %v1002_v21 = vadd.f32 %v1001_v19, %v849_v11 }
 0x5a7   :  { %1700 = vmatmul.mubr.msk.f32.vlgmr.msra.gmra.mrb[6].mxu0 %vm153_vm3, %v1002_v21 }
 0x5a8   :  { %1742 = vmatprep.mubr.msk.f32.mxu0 %vm1949_vm0, %v1948_v1  ;;  %1843 = vmatpush3.bf16.msra.mxu0 %v1842_v16 }
 0x5a9   :  { %1844 = vmatprep.subr.bf16.mxu0 %v1950_v8 }
 0x5ac   :  { %1846 = vmatpush3.bf16.msra.mxu0 %v1845_v31 }
 0x5ad   :  { %1847 = vmatprep.subr.bf16.mxu0 %v1950_v8 }
 0x5b0   :  { %1849 = vmatpush3.bf16.msra.mxu0 %v1848_v34 }
 0x5b1   :  { %1850 = vmatprep.subr.bf16.mxu0 %v1950_v8 }
 0x5b4   :  { %1852 = vmatpush3.bf16.msra.mxu0 %v1851_v37 }
 0x67a   :  { %v1147_v23 = vpop.f32.mrb[6].mxu0 }
 0x67b   :  { %v1861_v24 = vadd.f32 %v2106_v20, %v1147_v23  ;;  %v1701_v25 = vpop.f32.mrb[7].mxu0 }
 0x67d   :  { %1894 = vtanh.f32 %v1861_v24 }
 0x687   :  { %v1895_v9 = vpop.eup %1894 }
 0x688   :  { %v1153_v26 = vsub.f32 %v1895_v9, %v1002_v21 }
 0x68a   :  { %v1154_v1 = vmul.f32 %v1153_v26, %v2109_v28 }
 0x68c   :  { %v1155_v27 = vadd.f32 %v1154_v1, %v1002_v21 }
 0x68e   :  { %1724 = vmatmul.mubr.msk.f32.vlgmr.msra.gmra.mrb[10].mxu1 %vm153_vm3, %v1155_v27 }
 0x761   :  { %v1300_v38 = vpop.f32.mrb[10].mxu1 }
 0x762   :  { %v1862_v39 = vadd.f32 %v2106_v20, %v1300_v38  ;;  %v1725_v40 = vpop.f32.mrb[11].mxu1 }
 0x764   :  { %1896 = vtanh.f32 %v1862_v39 }
 0x76e   :  { %v1897_v41 = vpop.eup %1896 }
 0x76f   :  { %v1306_v42 = vsub.f32 %v1897_v41, %v1155_v27 }
 0x771   :  { %v1307_v43 = vmul.f32 %v1306_v42, %v2109_v28 }
 0x773   :  { %v1308_v44 = vadd.f32 %v1307_v43, %v1155_v27 }
 0x775   :  { %1310 = vst.msk [vmem:[#allocation2] sm:$0x3] %vm56_vm1, %v1308_v44 }
 0x77c   :  { %v1314_v45 = vld [vmem:[#allocation2] sm:$0x3] }
 0x77d   :  { %1743 = vmatmul.mubr.msk.f32.vlgmr.msra.gmra.mrb[8].mxu0 %vm153_vm3, %v1314_v45 }
 0x850   :  { %v1399_v47 = vpop.f32.mrb[8].mxu0 }
 0x851   :  { %v1400_v8 = vadd.f32 %v1435_v46, %v1399_v47  ;;  %v1744_v48 = vpop.f32.mrb[9].mxu0 }
 0x853   :  { %1404 = vst.msk [vmem:[%s2271_s7] sm:$0x3] %vm1403_vm4, %v1400_v8 }
 0x854   :  { %1409 = vsyncpa [#allocation5], 1 }
 0x855   :  { %1410 = vsyncpa [#allocation7], 1 }

</bundles_post_ra>
